<compile_context>
chip_gen: v7x
topology: tpu7x:2x2x1
jax: 0.10.0
libtpu: 0.0.40
codegen_flags: <defaults>
</compile_context>

<pallas_src>
import jax
import jax.numpy as jnp
from jax.experimental import pallas as pl
from jax.experimental.pallas import tpu as pltpu


def _round_up(n, m):
    return ((n + m - 1) // m) * m


def classifier_kernel(x_ref, w1_ref, b1_ref, w2_ref, b2_ref, o_ref):
    # x_ref:  [TB, H]    f32  (streamed; cast to bf16 in-kernel for the MXU)
    # w1_ref: [H, 128]   bf16,  b1_ref: [1, 128] f32
    # w2_ref: [128, CP]  bf16,  b2_ref: [1, CP]  f32   (CP = 128, zero-padded)
    # o_ref:  [TB, C]    f32   (narrow logical output, C = 4)
    x = x_ref[...].astype(jnp.bfloat16)

    # dense_1 + ReLU  (bf16 MXU matmul, f32 accumulate; bias/ReLU in f32)
    h = jnp.dot(x, w1_ref[...], preferred_element_type=jnp.float32)
    h = jnp.maximum(h + b1_ref[...], 0.0)

    # dense_2 + Sigmoid (tanh form -> EUP, no inf intermediate)
    y = jnp.dot(h.astype(jnp.bfloat16), w2_ref[...],
                preferred_element_type=jnp.float32) + b2_ref[...]
    sig = 0.5 * (jnp.tanh(0.5 * y) + 1.0)

    # Store only the logical classes (narrow writeback).
    o_ref[...] = sig[:, :o_ref.shape[1]].astype(o_ref.dtype)


def classifier_forward(x, w1, b1, w2, b2, *, tb=2048):
    """x: [B, H] f32; w1: [H, 128]; b1: [128]; w2: [128, 4]; b2: [4]."""
    B, H = x.shape
    HID = w1.shape[1]        # 128
    C = w2.shape[1]          # 4
    CP = 128                 # MXU-friendly padded width for w2/b2 (weights only)

    # ---- batch-tile selection ----------------------------------------------
    if B <= 8:
        TB = B                                   # full-array block (no 8-mult needed)
    else:
        TB = max(8, (min(tb, B) // 8) * 8)       # clamp to a multiple of 8
        # Prefer >=2 grid tiles so v7x's two TensorCores both get work.
        if pl.cdiv(B, TB) < 2 and B >= 16:
            TB = _round_up(pl.cdiv(B, 2), 8)

    # VMEM budget guard (v7x: 64 MiB physical, ~32 MiB default scoped limit).
    def _vmem_bytes(t):
        return (2 * t * H * 4                      # x, f32, double-buffered
                + 2 * t * C * 4                    # out, f32, double-buffered
                + 2 * (H * HID + HID * CP) * 2     # bf16 weights (2 bufs)
                + 2 * (HID + CP) * 4               # biases
                + 2 * t * HID * 4)                 # h intermediate + bf16 copy headroom
    while TB > 8 and _vmem_bytes(TB) > 24 * 1024 * 1024:
        TB = max(8, ((TB // 2) // 8) * 8)

    grid = (pl.cdiv(B, TB),)

    # ---- parameter prep (once, outside the grid) ---------------------------
    w1_bf = w1.astype(jnp.bfloat16)
    w2_pad = jnp.zeros((HID, CP), jnp.bfloat16).at[:, :C].set(
        w2.astype(jnp.bfloat16))
    b1_2d = b1.reshape(1, HID).astype(jnp.float32)
    b2_2d = jnp.zeros((1, CP), jnp.float32).at[:, :C].set(
        b2.reshape(1, C).astype(jnp.float32))

    out = pl.pallas_call(
        classifier_kernel,
        out_shape=jax.ShapeDtypeStruct((B, C), jnp.float32),
        grid=grid,
        in_specs=[
            pl.BlockSpec((TB, H), lambda i: (i, 0)),      # x: streamed per tile
            pl.BlockSpec((H, HID), lambda i: (0, 0)),     # weights: VMEM-resident
            pl.BlockSpec((1, HID), lambda i: (0, 0)),
            pl.BlockSpec((HID, CP), lambda i: (0, 0)),
            pl.BlockSpec((1, CP), lambda i: (0, 0)),
        ],
        out_specs=pl.BlockSpec((TB, C), lambda i: (i, 0)),
        compiler_params=pltpu.CompilerParams(
            dimension_semantics=("parallel",)),
    )(x, w1_bf, b1_2d, w2_pad, b2_2d)

    return out   # already the logical (B, 4)


if __name__ == "__main__":
    # Small config consistent with the module: hidden_size=32, batch=8.
    B, H, HID, C = 8, 32, 128, 4

    key = jax.random.PRNGKey(0)
    kx, kw1, kb1, kw2, kb2 = jax.random.split(key, 5)

    x = jax.random.normal(kx, (B, H), dtype=jnp.float32)
    # Deterministic param init (uniform, roughly matching nn.Linear scale).
    w1 = jax.random.uniform(kw1, (H, HID), jnp.float32, -1.0 / H**0.5, 1.0 / H**0.5)
    b1 = jax.random.uniform(kb1, (HID,), jnp.float32, -1.0 / H**0.5, 1.0 / H**0.5)
    w2 = jax.random.uniform(kw2, (HID, C), jnp.float32, -1.0 / HID**0.5, 1.0 / HID**0.5)
    b2 = jax.random.uniform(kb2, (C,), jnp.float32, -1.0 / HID**0.5, 1.0 / HID**0.5)

    out = classifier_forward(x, w1, b1, w2, b2)
    out = jax.block_until_ready(out)

    # Reference check in plain JAX (f32); loose tolerance for bf16 matmul inputs.
    ref = jax.nn.sigmoid(jnp.maximum(x @ w1 + b1, 0.0) @ w2 + b2)
    assert out.shape == (B, C)
    assert jnp.allclose(out, ref, atol=2e-2, rtol=2e-2), (
        f"max abs err {jnp.max(jnp.abs(out - ref))}")

    print("KERNEL_OK")
</pallas_src>

<mosaic_0001>
module attributes {stable_mosaic.version = 11 : i64} {
  func.func @classifier_kernel(%arg0: i32, %arg1: memref<8x32xf32, #tpu.memory_space<vmem>>, %arg2: memref<32x128xbf16, #tpu.memory_space<vmem>>, %arg3: memref<1x128xf32, #tpu.memory_space<vmem>>, %arg4: memref<128x128xbf16, #tpu.memory_space<vmem>>, %arg5: memref<1x128xf32, #tpu.memory_space<vmem>>, %arg6: memref<8x4xf32, #tpu.memory_space<vmem>>) attributes {dimension_semantics = [#tpu.dimension_semantics<parallel>], iteration_bounds = array<i64: 1>, scalar_prefetch = 0 : i64, scratch_operands = 0 : i64, tpu.core_type = #tpu.core_type<tc>, window_params = [{transform_indices = @transform_0, window_bounds = array<i64: 8, 32>}, {pipeline_mode = #tpu.pipeline_mode<synchronous>, transform_indices = @transform_1, window_bounds = array<i64: 32, 128>}, {pipeline_mode = #tpu.pipeline_mode<synchronous>, transform_indices = @transform_2, window_bounds = array<i64: 1, 128>}, {pipeline_mode = #tpu.pipeline_mode<synchronous>, transform_indices = @transform_3, window_bounds = array<i64: 128, 128>}, {pipeline_mode = #tpu.pipeline_mode<synchronous>, transform_indices = @transform_4, window_bounds = array<i64: 1, 128>}, {transform_indices = @transform_5, window_bounds = array<i64: 8, 4>}]} {
    %c0 = arith.constant 0 : index
    %c0_0 = arith.constant 0 : index
    %0 = vector.load %arg1[%c0, %c0_0] : memref<8x32xf32, #tpu.memory_space<vmem>>, vector<8x32xf32>
    %1 = arith.truncf %0 : vector<8x32xf32> to vector<8x32xbf16>
    %c0_1 = arith.constant 0 : index
    %c0_2 = arith.constant 0 : index
    %2 = vector.load %arg2[%c0_1, %c0_2] : memref<32x128xbf16, #tpu.memory_space<vmem>>, vector<32x128xbf16>
    %cst = arith.constant dense<0.000000e+00> : vector<8x128xf32>
    %3 = tpu.matmul %1, %2, %cst {dimension_numbers = #tpu.dot_dimension_numbers<[1], [0], [0], [1], [0, 0, 1, 1], [], []>} : vector<8x32xbf16>, vector<32x128xbf16>, vector<8x128xf32> -> vector<8x128xf32>
    %c0_3 = arith.constant 0 : index
    %c0_4 = arith.constant 0 : index
    %4 = vector.load %arg3[%c0_3, %c0_4] : memref<1x128xf32, #tpu.memory_space<vmem>>, vector<1x128xf32>
    %5 = vector.broadcast %4 : vector<1x128xf32> to vector<8x128xf32>
    %6 = arith.addf %3, %5 : vector<8x128xf32>
    %cst_5 = arith.constant 0.000000e+00 : f32
    %7 = vector.broadcast %cst_5 : f32 to vector<8x128xf32>
    %8 = arith.maximumf %6, %7 : vector<8x128xf32>
    %9 = arith.truncf %8 : vector<8x128xf32> to vector<8x128xbf16>
    %c0_6 = arith.constant 0 : index
    %c0_7 = arith.constant 0 : index
    %10 = vector.load %arg4[%c0_6, %c0_7] : memref<128x128xbf16, #tpu.memory_space<vmem>>, vector<128x128xbf16>
    %cst_8 = arith.constant dense<0.000000e+00> : vector<8x128xf32>
    %11 = tpu.matmul %9, %10, %cst_8 {dimension_numbers = #tpu.dot_dimension_numbers<[1], [0], [0], [1], [0, 0, 1, 1], [], []>} : vector<8x128xbf16>, vector<128x128xbf16>, vector<8x128xf32> -> vector<8x128xf32>
    %c0_9 = arith.constant 0 : index
    %c0_10 = arith.constant 0 : index
    %12 = vector.load %arg5[%c0_9, %c0_10] : memref<1x128xf32, #tpu.memory_space<vmem>>, vector<1x128xf32>
    %13 = vector.broadcast %12 : vector<1x128xf32> to vector<8x128xf32>
    %14 = arith.addf %11, %13 : vector<8x128xf32>
    %cst_11 = arith.constant 5.000000e-01 : f32
    %15 = vector.broadcast %cst_11 : f32 to vector<8x128xf32>
    %16 = arith.mulf %15, %14 : vector<8x128xf32>
    %17 = math.tanh %16 : vector<8x128xf32>
    %cst_12 = arith.constant 1.000000e+00 : f32
    %18 = vector.broadcast %cst_12 : f32 to vector<8x128xf32>
    %19 = arith.addf %17, %18 : vector<8x128xf32>
    %cst_13 = arith.constant 5.000000e-01 : f32
    %20 = vector.broadcast %cst_13 : f32 to vector<8x128xf32>
    %21 = arith.mulf %20, %19 : vector<8x128xf32>
    %22 = vector.extract_strided_slice %21 {offsets = [0, 0], sizes = [8, 4], strides = [1, 1]} : vector<8x128xf32> to vector<8x4xf32>
    %c0_14 = arith.constant 0 : index
    %c0_15 = arith.constant 0 : index
    %23 = vector.load %arg6[%c0_14, %c0_15] : memref<8x4xf32, #tpu.memory_space<vmem>>, vector<8x4xf32>
    tpu.vector_store %arg6[%c0_14, %c0_15], %22 {strides = array<i32>} : memref<8x4xf32, #tpu.memory_space<vmem>>, vector<8x4xf32>,
    return
  }
  func.func @transform_0(%arg0: i32) -> (i32, i32) {
    %c0_i32 = arith.constant 0 : i32
    %c0_i32_0 = arith.constant 0 : i32
    return %arg0, %c0_i32 : i32, i32
  }
  func.func @transform_1(%arg0: i32) -> (i32, i32) {
    %c0_i32 = arith.constant 0 : i32
    %c0_i32_0 = arith.constant 0 : i32
    %c0_i32_1 = arith.constant 0 : i32
    return %c0_i32, %c0_i32_0 : i32, i32
  }
  func.func @transform_2(%arg0: i32) -> (i32, i32) {
    %c0_i32 = arith.constant 0 : i32
    %c0_i32_0 = arith.constant 0 : i32
    %c0_i32_1 = arith.constant 0 : i32
    return %c0_i32, %c0_i32_0 : i32, i32
  }
  func.func @transform_3(%arg0: i32) -> (i32, i32) {
    %c0_i32 = arith.constant 0 : i32
    %c0_i32_0 = arith.constant 0 : i32
    %c0_i32_1 = arith.constant 0 : i32
    return %c0_i32, %c0_i32_0 : i32, i32
  }
  func.func @transform_4(%arg0: i32) -> (i32, i32) {
    %c0_i32 = arith.constant 0 : i32
    %c0_i32_0 = arith.constant 0 : i32
    %c0_i32_1 = arith.constant 0 : i32
    return %c0_i32, %c0_i32_0 : i32, i32
  }
  func.func @transform_5(%arg0: i32) -> (i32, i32) {
    %c0_i32 = arith.constant 0 : i32
    %c0_i32_0 = arith.constant 0 : i32
    return %arg0, %c0_i32 : i32, i32
  }
}

</mosaic_0001>

<bundles_post_ra>
// kernel: tpu_custom_call.1
= control target key start
LH: loop header
LB: loop body
LE: loop exit
PB: predicated region body
PF: predicated region fallthrough
CT: control target
= control target key end

     0   :  { %10 = vsyncpa [#allocation3], 0  ;;  %s484_s0 = inlined_call_operand.hbm [shape: f32[8,32], index: 0, kind: input, shape index: {}]   ;;  %s485_s1 = inlined_call_operand.hbm [shape: bf16[32,128], index: 1, kind: input, shape index: {}]   ;;  %s486_s2 = inlined_call_operand.vmem [shape: f32[1,128], index: 2, kind: input, shape index: {}]   ;;  %s487_s3 = inlined_call_operand.hbm [shape: bf16[128,128], index: 3, kind: input, shape index: {}]   ;;  %s488_s4 = inlined_call_operand.vmem [shape: f32[1,128], index: 4, kind: input, shape index: {}]   ;;  %s489_s5 = inlined_call_operand.vmem [shape: f32[8,4], index: 5, kind: output, shape index: {}]  }
   0x1   :  { %11 = vsyncpa [#allocation5], 0  ;;  %s396_s18 = smov [#allocation4]   ;;  %s326_s22 = scalar_lea.hbm %s485_s1, 256 }
   0x2   :  { %s27_s19 = sshll.u32 %s396_s18, 4  ;;  %p327_p0 = scmp.ne.s32.totalorder %s485_s1, %s326_s22  ;;  %s28_s19 = int_to_ptr.vmem [resolvable:$true] %s27_s19 }
   0x3   :  { %p330_p1 = scmp.lt.u32.totalorder %s326_s22, %s485_s1 }
   0x5   :  { %p332_p2 = pnand %p330_p1, %p327_p0 }
   0x7   :  { %335 = shalt.err (!%p332_p2)
}
   0x8   :  { %s336_s27 = scalar_lea.vmem %s28_s19, 256  ;;  %p341_p4 = scmp.lt.s32.totalorder %s28_s19, %s28_s19 }
   0x9   :  { %p337_p3 = scmp.ne.s32.totalorder %s28_s19, %s336_s27  ;;  %p342_p5 = scmp.lt.s32.totalorder %s336_s27, %s336_s27 }
   0xb   :  { %p343_p6 = por %p342_p5, %p341_p4 }
   0xd   :  { %p344_p7 = pnand %p343_p6, %p337_p3 }
   0xf   :  { %347 = shalt.err (!%p344_p7)
}
  0x10   :  { %s397_s28 = smov 64   ;;  %s398_s29 = smov 4  }
  0x11   :  { %33 = dma.hbm_to_vmem [thread:$0]  %s485_s1, 256, %s28_s19, [#allocation5], %s397_s28, %s397_s28, %s398_s29  }
  0x12   :  { %s399_s7 = smov [#allocation2]   ;;  %s400_s9 = smov [#allocation6]  }
  0x13   :  { %s18_s8 = sshll.u32 %s399_s7, 4  ;;  %s41_s10 = sshll.u32 %s400_s9, 4  ;;  %s19_s8 = int_to_ptr.vmem [resolvable:$true] %s18_s8  ;;  %s42_s10 = int_to_ptr.vmem [resolvable:$true] %s41_s10 }
  0x14   :  { %s348_s13 = scalar_lea.hbm %s484_s0, 128 }
  0x15   :  { %p349_p8 = scmp.ne.s32.totalorder %s484_s0, %s348_s13  ;;  %p352_p9 = scmp.lt.u32.totalorder %s348_s13, %s484_s0 }
  0x17   :  { %p354_p10 = pnand %p352_p9, %p349_p8 }
  0x19   :  { %357 = shalt.err (!%p354_p10)
}
  0x1a   :  { %s358_s1 = scalar_lea.vmem %s19_s8, 128  ;;  %p363_p12 = scmp.lt.s32.totalorder %s19_s8, %s19_s8 }
  0x1b   :  { %p359_p11 = scmp.ne.s32.totalorder %s19_s8, %s358_s1  ;;  %p364_p13 = scmp.lt.s32.totalorder %s358_s1, %s358_s1 }
  0x1d   :  { %p365_p0 = por %p364_p13, %p363_p12 }
  0x1f   :  { %p366_p1 = pnand %p365_p0, %p359_p11 }
  0x21   :  { %369 = shalt.err (!%p366_p1)
}
  0x22   :  { %21 = dma.hbm_to_vmem [thread:$0]  %s484_s0, 128, %s19_s8, [#allocation3]  }
  0x23   :  { %s370_s22 = scalar_lea.hbm %s487_s3, 1024 }
  0x24   :  { %p371_p2 = scmp.ne.s32.totalorder %s487_s3, %s370_s22  ;;  %p374_p3 = scmp.lt.u32.totalorder %s370_s22, %s487_s3 }
  0x26   :  { %p376_p4 = pnand %p374_p3, %p371_p2 }
  0x28   :  { %379 = shalt.err (!%p376_p4)
}
  0x29   :  { %s380_s27 = scalar_lea.vmem %s42_s10, 1024  ;;  %p385_p6 = scmp.lt.s32.totalorder %s42_s10, %s42_s10 }
  0x2a   :  { %p381_p5 = scmp.ne.s32.totalorder %s42_s10, %s380_s27  ;;  %p386_p7 = scmp.lt.s32.totalorder %s380_s27, %s380_s27 }
  0x2c   :  { %p387_p8 = por %p386_p7, %p385_p6 }
  0x2e   :  { %p388_p9 = pnand %p387_p8, %p381_p5 }
  0x30   :  { %391 = shalt.err (!%p388_p9)
}
  0x31   :  { %47 = dma.hbm_to_vmem [thread:$0]  %s487_s3, 1024, %s42_s10, [#allocation5], %s397_s28, %s397_s28, %s398_s29  }
  0x32   :  { %392 = dma.done.wait [#allocation3], 128  }
  0x33   :  { %393 = vsyncadd [#allocation3], 4294967168 }
  0x34   :  { %394 = dma.done.wait [#allocation5], 1280  }
  0x35   :  { %395 = vsyncadd [#allocation5], 4294966016  ;;  %v401_v0 = vmov 0.0   ;;  %vm402_vm0 = vmmov 0   ;;  %v314_v1 = vld [vmem:[#allocation4] sm:$0xff]   ;;  %v315_v2 = vld [vmem:[#allocation4 + $0x8] sm:$0xff]  }
  0x36   :  { %279 = vmatprep.subr.bf16.mxu0 %v401_v0  ;;  %283 = vmatprep.mubr.msk.bf16.mxu0 %vm402_vm0, %v401_v0  ;;  %v60_v3 = vld [vmem:[#allocation2] sm:$0xff]  ;;  %v316_v4 = vld [vmem:[#allocation6] sm:$0xff]   ;;  %vm85_vm1 = vcmask 261120   ;;  %v318_v7 = vld [vmem:[#allocation6 + $0x10] sm:$0xff]   ;;  %vm246_vm2 = vcmask 31744  }
  0x37   :  { %287 = vmatprep.subr.bf16.mxu1 %v401_v0  ;;  %303 = vmatprep.mubr.msk.bf16.mxu1 %vm402_vm0, %v401_v0  ;;  %v61_v5 = vpack.c.bf16 %v60_v3, %v60_v3  ;;  %v317_v6 = vld [vmem:[#allocation6 + $0x8] sm:$0xff]   ;;  %v319_v8 = vld [vmem:[#allocation6 + $0x18] sm:$0xff]   ;;  %v320_v9 = vld [vmem:[#allocation6 + $0x20] sm:$0xff]  }
  0x38   :  { %280 = vmatpush3.bf16.msra.mxu0 %v314_v1  ;;  %288 = vmatpush3.bf16.msra.mxu1 %v316_v4  ;;  %v321_v10 = vld [vmem:[#allocation6 + $0x28] sm:$0xff]   ;;  %v322_v11 = vld [vmem:[#allocation6 + $0x30] sm:$0xff]   ;;  %v323_v12 = vld [vmem:[#allocation6 + $0x38] sm:$0xff]  }
  0x39   :  { %281 = vmatprep.subr.bf16.mxu0 %v401_v0  ;;  %289 = vmatprep.subr.bf16.mxu1 %v401_v0  ;;  %v254_v13 = vld [vmem:[%s486_s2] ss:$0 sm:$0xff] }
  0x3a   :  { %v258_v21 = vld [vmem:[%s488_s4] ss:$0 sm:$0xff] }
  0x3c   :  { %282 = vmatpush3.bf16.msra.mxu0 %v315_v2  ;;  %290 = vmatpush3.bf16.msra.mxu1 %v317_v6 }
  0x3d   :  { %291 = vmatprep.subr.bf16.mxu1 %v401_v0 }
  0x3f   :  { %284 = vmatmul.mubr.msk.bf16.vlgmr.msra.gmra.mrb[0].mxu0 %vm85_vm1, %v61_v5 }
  0x40   :  { %292 = vmatpush3.bf16.msra.mxu1 %v318_v7 }
  0x41   :  { %293 = vmatprep.subr.bf16.mxu1 %v401_v0 }
  0x44   :  { %294 = vmatpush3.bf16.msra.mxu1 %v319_v8 }
  0x45   :  { %295 = vmatprep.subr.bf16.mxu1 %v401_v0 }
  0x48   :  { %296 = vmatpush3.bf16.msra.mxu1 %v320_v9 }
  0x49   :  { %297 = vmatprep.subr.bf16.mxu1 %v401_v0 }
  0x4c   :  { %298 = vmatpush3.bf16.msra.mxu1 %v321_v10 }
  0x4d   :  { %299 = vmatprep.subr.bf16.mxu1 %v401_v0 }
  0x50   :  { %300 = vmatpush3.bf16.msra.mxu1 %v322_v11 }
  0x51   :  { %301 = vmatprep.subr.bf16.mxu1 %v401_v0 }
  0x54   :  { %302 = vmatpush3.bf16.msra.mxu1 %v323_v12 }
 0x112   :  { %v123_v14 = vpop.f32.mrb[0].mxu0 }
 0x113   :  { %v124_v15 = vadd.f32 %v254_v13, %v123_v14  ;;  %v285_v16 = vpop.f32.mrb[1].mxu0 }
 0x114   :  { %v126_v17 = vpop.f32.mrb[2].mxu0 }
 0x115   :  { %v129_v18 = vmax.f32 %v124_v15, 0.0  ;;  %v286_v19 = vpop.f32.mrb[3].mxu0 }
 0x117   :  { %v130_v20 = vpack.c.bf16 %v129_v18, %v129_v18 }
 0x119   :  { %304 = vmatmul.mubr.bf16.vlgmr.msra.gmra.mrb[0].mxu1 %v130_v20 }
 0x1ec   :  { %v236_v22 = vpop.f32.mrb[0].mxu1 }
 0x1ed   :  { %v237_v23 = vadd.f32 %v258_v21, %v236_v22  ;;  %v305_v24 = vpop.f32.mrb[1].mxu1 }
 0x1ee   :  { %v239_v25 = vpop.f32.mrb[2].mxu1 }
 0x1ef   :  { %v242_v26 = vmul.f32 0.5, %v237_v23  ;;  %v306_v27 = vpop.f32.mrb[3].mxu1 }
 0x1f1   :  { %324 = vtanh.f32 %v242_v26 }
 0x1fb   :  { %v325_v28 = vpop.eup %324 }
 0x1fc   :  { %v244_v29 = vadd.f32 1.0, %v325_v28 }
 0x1fe   :  { %v245_v30 = vmul.f32 0.5, %v244_v29 }
 0x200   :  { %247 = vst.msk [vmem:[%s489_s5] sm:$0xff] %vm246_vm2, %v245_v30 }
 0x201   :  { %252 = vsyncpa [#allocation3], 1 }
 0x202   :  { %253 = vsyncpa [#allocation5], 1 }

</bundles_post_ra>
